<compile_context>
chip_gen: v5e
topology: v5e:2x2
jax: 0.10.0
libtpu: 0.0.40
codegen_flags: <defaults>
</compile_context>

<pallas_src>
import jax
import jax.numpy as jnp
from jax import lax
from jax.experimental import pallas as pl
from jax.experimental.pallas import tpu as pltpu

_EPS = 1e-12      # F.normalize default eps (clamp_min on the L2 norm)
_LANE = 128


# --------------------------------------------------------------------------
# Single-pass kernel: full channel dim resident per block.
# --------------------------------------------------------------------------
def _rmsnorm_kernel(x_ref, g_ref, o_ref):
    # x_ref / o_ref block: (1, C, rows, 128); g_ref: (C,) f32 in SMEM,
    # already pre-scaled by sqrt(C) on the host.
    C = x_ref.shape[1]
    rows, lanes = x_ref.shape[2], x_ref.shape[3]
    unroll = C <= 32

    def acc_body(c, acc):
        xc = x_ref[0, c].astype(jnp.float32)
        return acc + xc * xc

    sumsq = lax.fori_loop(0, C, acc_body,
                          jnp.zeros((rows, lanes), jnp.float32),
                          unroll=unroll)
    # clamp(sumsq, eps^2) == clamp(norm, eps); rsqrt goes to the EUP slot.
    inv = lax.rsqrt(jnp.maximum(sumsq, _EPS * _EPS))

    @pl.loop(0, C, unroll=unroll)
    def _(c):
        xc = x_ref[0, c].astype(jnp.float32)
        o_ref[0, c] = (xc * inv * g_ref[c]).astype(o_ref.dtype)


# --------------------------------------------------------------------------
# Large-C fallback, pass 1: partial sum of squares over a channel-split
# ('arbitrary') grid axis, finalized to inv = rsqrt(max(sumsq, eps^2)).
# --------------------------------------------------------------------------
def _sumsq_kernel(x_ref, inv_ref, acc_ref):
    # x_ref: (1, c_blk, rows, 128); inv_ref: (1, rows, 128) f32; acc_ref: (rows, 128) f32.
    cb = pl.program_id(2)

    @pl.when(cb == 0)
    def _():
        acc_ref[...] = jnp.zeros_like(acc_ref)

    c_blk = x_ref.shape[1]

    def body(c, acc):
        xc = x_ref[0, c].astype(jnp.float32)
        return acc + xc * xc

    acc_ref[...] += lax.fori_loop(0, c_blk, body,
                                  jnp.zeros(acc_ref.shape, jnp.float32))

    @pl.when(cb == pl.num_programs(2) - 1)
    def _():
        inv_ref[0] = lax.rsqrt(jnp.maximum(acc_ref[...], _EPS * _EPS))


# --------------------------------------------------------------------------
# Large-C fallback, pass 2: out = x * inv * g[c]   (all axes parallel).
# --------------------------------------------------------------------------
def _apply_kernel(x_ref, inv_ref, g_ref, o_ref):
    # x_ref / o_ref: (1, c_blk, rows, 128); inv_ref: (1, rows, 128); g_ref: (C,) SMEM.
    c_blk = x_ref.shape[1]
    c0 = pl.program_id(1) * c_blk
    inv = inv_ref[0]

    @pl.loop(0, c_blk)
    def _(c):
        xc = x_ref[0, c].astype(jnp.float32)
        o_ref[0, c] = (xc * inv * g_ref[c0 + c]).astype(o_ref.dtype)


# --------------------------------------------------------------------------
# Wrapper
# --------------------------------------------------------------------------
def rmsnorm_pallas(x, g, *, force_channel_split=False):
    """x: (N, C, D, H, W); g: (1, C, 1, 1, 1). Returns RMSNorm(x) (PyTorch semantics)."""
    N, C, D, H, W = x.shape
    S = D * H * W
    itemsize = jnp.dtype(x.dtype).itemsize
    # sublane tile multiple: (8,128) f32, (16,128) bf16, (32,128) int8/fp8
    sub = 8 * max(1, 4 // itemsize)
    R = pl.cdiv(S, _LANE)
    pad_s = R * _LANE - S          # nonzero only when S is not 128-aligned

    # ---- generation-aware VMEM budget -------------------------------------
    try:
        info = pltpu.get_tpu_info()
        vmem_cap = int(getattr(info, "vmem_capacity_bytes", 64 * 1024 * 1024))
    except Exception:
        vmem_cap = 64 * 1024 * 1024            # conservative (v7x per-TC VMEM)
    if vmem_cap >= 100 * 1024 * 1024:          # v5e / v6e: 128 MiB physical
        vmem_limit = 64 * 1024 * 1024
    else:                                      # v7x: 64 MiB per TensorCore
        vmem_limit = 40 * 1024 * 1024
    budget = (vmem_limit // 4) * 3             # headroom for compiler scratch

    # ---- lane-dense layout: flatten spatial to (R, 128) --------------------
    x3 = x.reshape(N, C, S)
    if pad_s:   # only for non-128-aligned spatial sizes (< 128 elements of pad)
        x3 = jnp.pad(x3, ((0, 0), (0, 0), (0, pad_s)))
    x4 = x3.reshape(N, C, R, _LANE)
    # fold sqrt(C) into g on the host
    g_s = g.reshape(C).astype(jnp.float32) * (float(C) ** 0.5)

    # bytes per sublane row: in+out blocks double-buffered + f32 sumsq/inv temps
    row_bytes = C * _LANE * itemsize * 4 + 2 * _LANE * 4
    max_rows = budget // row_bytes
    min_rows = R if R < sub else sub

    cp = dict(vmem_limit_bytes=vmem_limit)

    if max_rows >= min_rows and not force_channel_split:
        # ------------------------- single-pass path -------------------------
        if R <= max_rows:
            t_sub = R
        else:
            nt = pl.cdiv(R, max_rows)                       # min number of tiles
            t_sub = pl.cdiv(pl.cdiv(R, nt), sub) * sub      # balanced tile
            if t_sub > max_rows:
                t_sub = max(sub, (max_rows // sub) * sub)
        # keep >= 4 grid steps so v7x's two TensorCores stay busy & balanced
        while t_sub > sub and N * pl.cdiv(R, t_sub) < 4:
            new_t = max(sub, ((t_sub // 2) // sub) * sub)
            if new_t == t_sub:
                break
            t_sub = new_t
        num_tiles = pl.cdiv(R, t_sub)

        out = pl.pallas_call(
            _rmsnorm_kernel,
            out_shape=jax.ShapeDtypeStruct((N, C, R, _LANE), x.dtype),
            grid_spec=pltpu.PrefetchScalarGridSpec(
                num_scalar_prefetch=0,
                grid=(N, num_tiles),
                in_specs=[
                    pl.BlockSpec((1, C, t_sub, _LANE), lambda n, s: (n, 0, s, 0)),
                    pl.BlockSpec(memory_space=pltpu.MemorySpace.SMEM),
                ],
                out_specs=pl.BlockSpec((1, C, t_sub, _LANE),
                                       lambda n, s: (n, 0, s, 0)),
            ),
            compiler_params=pltpu.CompilerParams(
                dimension_semantics=("parallel", "parallel"), **cp),
        )(x4, g_s)
    else:
        # ---------------- large-C fallback: split the channel axis ----------
        t_sub = min_rows
        unit = t_sub * _LANE * (4 * itemsize + 4)   # per-channel block bytes (+f32 temp)
        c_blk = max(1, min(C, (budget // 2) // unit))
        if force_channel_split:
            c_blk = min(c_blk, max(1, C // 2))
        while C % c_blk:            # snap to a divisor of C (no ragged C blocks)
            c_blk -= 1
        c_tiles = C // c_blk
        s_tiles = pl.cdiv(R, t_sub)

        inv = pl.pallas_call(
            _sumsq_kernel,
            out_shape=jax.ShapeDtypeStruct((N, R, _LANE), jnp.float32),
            grid_spec=pltpu.PrefetchScalarGridSpec(
                num_scalar_prefetch=0,
                grid=(N, s_tiles, c_tiles),
                in_specs=[pl.BlockSpec((1, c_blk, t_sub, _LANE),
                                       lambda n, s, c: (n, c, s, 0))],
                out_specs=pl.BlockSpec((1, t_sub, _LANE),
                                       lambda n, s, c: (n, s, 0)),
                scratch_shapes=[pltpu.VMEM((t_sub, _LANE), jnp.float32)],
            ),
            compiler_params=pltpu.CompilerParams(
                dimension_semantics=("parallel", "parallel", "arbitrary"), **cp),
        )(x4)

        out = pl.pallas_call(
            _apply_kernel,
            out_shape=jax.ShapeDtypeStruct((N, C, R, _LANE), x.dtype),
            grid_spec=pltpu.PrefetchScalarGridSpec(
                num_scalar_prefetch=0,
                grid=(N, c_tiles, s_tiles),
                in_specs=[
                    pl.BlockSpec((1, c_blk, t_sub, _LANE),
                                 lambda n, c, s: (n, c, s, 0)),
                    pl.BlockSpec((1, t_sub, _LANE), lambda n, c, s: (n, s, 0)),
                    pl.BlockSpec(memory_space=pltpu.MemorySpace.SMEM),
                ],
                out_specs=pl.BlockSpec((1, c_blk, t_sub, _LANE),
                                       lambda n, c, s: (n, c, s, 0)),
            ),
            compiler_params=pltpu.CompilerParams(
                dimension_semantics=("parallel", "parallel", "parallel"), **cp),
        )(x4, inv, g_s)

    out = out.reshape(N, C, R * _LANE)
    if pad_s:
        out = out[:, :, :S]
    return out.reshape(N, C, D, H, W)


def rmsnorm_ref(x, g):
    # Pure-JAX reference matching F.normalize(x, dim=1) * g * sqrt(C).
    C = x.shape[1]
    xf = x.astype(jnp.float32)
    norm = jnp.sqrt(jnp.sum(xf * xf, axis=1, keepdims=True))
    norm = jnp.maximum(norm, _EPS)
    return (xf / norm * g.astype(jnp.float32) * (float(C) ** 0.5)).astype(x.dtype)


if __name__ == "__main__":
    key = jax.random.PRNGKey(0)
    kx, kg, kx2 = jax.random.split(key, 3)

    # Primary test: 128-aligned spatial (no host pad), single-pass kernel.
    N, C, D, H, W = 2, 4, 8, 8, 8
    x = jax.random.normal(kx, (N, C, D, H, W), dtype=jnp.float32)
    g = jax.random.uniform(kg, (1, C, 1, 1, 1), dtype=jnp.float32,
                           minval=0.5, maxval=1.5)

    out = jax.block_until_ready(rmsnorm_pallas(x, g))
    ref = rmsnorm_ref(x, g)
    assert out.shape == x.shape
    assert jnp.allclose(out, ref, atol=1e-5, rtol=1e-5), "single-pass mismatch"

    # Exercise the large-C / channel-split fallback (two-pass) on the same data.
    out2 = jax.block_until_ready(rmsnorm_pallas(x, g, force_channel_split=True))
    assert jnp.allclose(out2, ref, atol=1e-5, rtol=1e-5), "channel-split mismatch"

    # Non-128-aligned spatial size (masked boundary block + small pad path).
    x3 = jax.random.normal(kx2, (1, 3, 5, 6, 7), dtype=jnp.float32)
    g3 = jnp.ones((1, 3, 1, 1, 1), dtype=jnp.float32)
    out3 = jax.block_until_ready(rmsnorm_pallas(x3, g3))
    assert jnp.allclose(out3, rmsnorm_ref(x3, g3), atol=1e-5, rtol=1e-5), \
        "unaligned-spatial mismatch"

    print("KERNEL_OK")
</pallas_src>

<mosaic_0001>
module attributes {stable_mosaic.version = 11 : i64} {
  func.func @_rmsnorm_kernel(%arg0: i32, %arg1: i32, %arg2: memref<1x4x4x128xf32, #tpu.memory_space<vmem>>, %arg3: memref<4xf32, #tpu.memory_space<smem>>, %arg4: memref<1x4x4x128xf32, #tpu.memory_space<vmem>>) attributes {dimension_semantics = [#tpu.dimension_semantics<parallel>, #tpu.dimension_semantics<parallel>], iteration_bounds = array<i64: 2, 1>, scalar_prefetch = 0 : i64, scratch_operands = 0 : i64, tpu.core_type = #tpu.core_type<tc>, window_params = [{transform_indices = @transform_0, window_bounds = array<i64: 1, 4, 4, 128>}, {transform_indices = @transform_1, window_bounds = array<i64: 4>}, {transform_indices = @transform_2, window_bounds = array<i64: 1, 4, 4, 128>}]} {
    %cst = arith.constant 0.000000e+00 : f32
    %0 = vector.broadcast %cst : f32 to vector<4x128xf32>
    %c0_i32 = arith.constant 0 : i32
    %c0 = arith.constant 0 : index
    %1 = arith.index_cast %c0_i32 : i32 to index
    %c0_0 = arith.constant 0 : index
    %c0_1 = arith.constant 0 : index
    %2 = vector.load %arg2[%c0, %1, %c0_0, %c0_1] : memref<1x4x4x128xf32, #tpu.memory_space<vmem>>, vector<1x1x4x128xf32>
    %3 = vector.shape_cast %2 : vector<1x1x4x128xf32> to vector<4x128xf32>
    %4 = arith.mulf %3, %3 : vector<4x128xf32>
    %5 = arith.addf %0, %4 : vector<4x128xf32>
    %c1_i32 = arith.constant 1 : i32
    %c0_2 = arith.constant 0 : index
    %6 = arith.index_cast %c1_i32 : i32 to index
    %c0_3 = arith.constant 0 : index
    %c0_4 = arith.constant 0 : index
    %7 = vector.load %arg2[%c0_2, %6, %c0_3, %c0_4] : memref<1x4x4x128xf32, #tpu.memory_space<vmem>>, vector<1x1x4x128xf32>
    %8 = vector.shape_cast %7 : vector<1x1x4x128xf32> to vector<4x128xf32>
    %9 = arith.mulf %8, %8 : vector<4x128xf32>
    %10 = arith.addf %5, %9 : vector<4x128xf32>
    %c2_i32 = arith.constant 2 : i32
    %c0_5 = arith.constant 0 : index
    %11 = arith.index_cast %c2_i32 : i32 to index
    %c0_6 = arith.constant 0 : index
    %c0_7 = arith.constant 0 : index
    %12 = vector.load %arg2[%c0_5, %11, %c0_6, %c0_7] : memref<1x4x4x128xf32, #tpu.memory_space<vmem>>, vector<1x1x4x128xf32>
    %13 = vector.shape_cast %12 : vector<1x1x4x128xf32> to vector<4x128xf32>
    %14 = arith.mulf %13, %13 : vector<4x128xf32>
    %15 = arith.addf %10, %14 : vector<4x128xf32>
    %c3_i32 = arith.constant 3 : i32
    %c0_8 = arith.constant 0 : index
    %16 = arith.index_cast %c3_i32 : i32 to index
    %c0_9 = arith.constant 0 : index
    %c0_10 = arith.constant 0 : index
    %17 = vector.load %arg2[%c0_8, %16, %c0_9, %c0_10] : memref<1x4x4x128xf32, #tpu.memory_space<vmem>>, vector<1x1x4x128xf32>
    %18 = vector.shape_cast %17 : vector<1x1x4x128xf32> to vector<4x128xf32>
    %19 = arith.mulf %18, %18 : vector<4x128xf32>
    %20 = arith.addf %15, %19 : vector<4x128xf32>
    %c4_i32 = arith.constant 4 : i32
    %cst_11 = arith.constant 1.000000e-24 : f32
    %21 = vector.broadcast %cst_11 : f32 to vector<4x128xf32>
    %22 = arith.maximumf %20, %21 : vector<4x128xf32>
    %23 = math.rsqrt %22 : vector<4x128xf32>
    %c0_i32_12 = arith.constant 0 : i32
    %c1_i32_13 = arith.constant 1 : i32
    %24 = arith.muli %c0_i32_12, %c1_i32_13 : i32
    %c0_i32_14 = arith.constant 0 : i32
    %25 = arith.addi %c0_i32_14, %24 : i32
    %c0_15 = arith.constant 0 : index
    %26 = arith.index_cast %25 : i32 to index
    %c0_16 = arith.constant 0 : index
    %c0_17 = arith.constant 0 : index
    %27 = vector.load %arg2[%c0_15, %26, %c0_16, %c0_17] : memref<1x4x4x128xf32, #tpu.memory_space<vmem>>, vector<1x1x4x128xf32>
    %28 = vector.shape_cast %27 : vector<1x1x4x128xf32> to vector<4x128xf32>
    %29 = arith.mulf %28, %23 : vector<4x128xf32>
    %30 = arith.index_cast %25 : i32 to index
    %31 = memref.load %arg3[%30] : memref<4xf32, #tpu.memory_space<smem>>
    %32 = vector.broadcast %31 : f32 to vector<4x128xf32>
    %33 = arith.mulf %29, %32 : vector<4x128xf32>
    %c0_18 = arith.constant 0 : index
    %34 = arith.index_cast %25 : i32 to index
    %c0_19 = arith.constant 0 : index
    %c0_20 = arith.constant 0 : index
    %35 = vector.load %arg4[%c0_18, %34, %c0_19, %c0_20] : memref<1x4x4x128xf32, #tpu.memory_space<vmem>>, vector<1x1x4x128xf32>
    %36 = vector.shape_cast %35 : vector<1x1x4x128xf32> to vector<4x128xf32>
    %37 = vector.shape_cast %33 : vector<4x128xf32> to vector<1x1x4x128xf32>
    tpu.vector_store %arg4[%c0_18, %34, %c0_19, %c0_20], %37 {strides = array<i32>} : memref<1x4x4x128xf32, #tpu.memory_space<vmem>>, vector<1x1x4x128xf32>,
    %c1_i32_21 = arith.constant 1 : i32
    %c1_i32_22 = arith.constant 1 : i32
    %38 = arith.muli %c1_i32_21, %c1_i32_22 : i32
    %c0_i32_23 = arith.constant 0 : i32
    %39 = arith.addi %c0_i32_23, %38 : i32
    %c0_24 = arith.constant 0 : index
    %40 = arith.index_cast %39 : i32 to index
    %c0_25 = arith.constant 0 : index
    %c0_26 = arith.constant 0 : index
    %41 = vector.load %arg2[%c0_24, %40, %c0_25, %c0_26] : memref<1x4x4x128xf32, #tpu.memory_space<vmem>>, vector<1x1x4x128xf32>
    %42 = vector.shape_cast %41 : vector<1x1x4x128xf32> to vector<4x128xf32>
    %43 = arith.mulf %42, %23 : vector<4x128xf32>
    %44 = arith.index_cast %39 : i32 to index
    %45 = memref.load %arg3[%44] : memref<4xf32, #tpu.memory_space<smem>>
    %46 = vector.broadcast %45 : f32 to vector<4x128xf32>
    %47 = arith.mulf %43, %46 : vector<4x128xf32>
    %c0_27 = arith.constant 0 : index
    %48 = arith.index_cast %39 : i32 to index
    %c0_28 = arith.constant 0 : index
    %c0_29 = arith.constant 0 : index
    %49 = vector.load %arg4[%c0_27, %48, %c0_28, %c0_29] : memref<1x4x4x128xf32, #tpu.memory_space<vmem>>, vector<1x1x4x128xf32>
    %50 = vector.shape_cast %49 : vector<1x1x4x128xf32> to vector<4x128xf32>
    %51 = vector.shape_cast %47 : vector<4x128xf32> to vector<1x1x4x128xf32>
    tpu.vector_store %arg4[%c0_27, %48, %c0_28, %c0_29], %51 {strides = array<i32>} : memref<1x4x4x128xf32, #tpu.memory_space<vmem>>, vector<1x1x4x128xf32>,
    %c2_i32_30 = arith.constant 2 : i32
    %c1_i32_31 = arith.constant 1 : i32
    %52 = arith.muli %c2_i32_30, %c1_i32_31 : i32
    %c0_i32_32 = arith.constant 0 : i32
    %53 = arith.addi %c0_i32_32, %52 : i32
    %c0_33 = arith.constant 0 : index
    %54 = arith.index_cast %53 : i32 to index
    %c0_34 = arith.constant 0 : index
    %c0_35 = arith.constant 0 : index
    %55 = vector.load %arg2[%c0_33, %54, %c0_34, %c0_35] : memref<1x4x4x128xf32, #tpu.memory_space<vmem>>, vector<1x1x4x128xf32>
    %56 = vector.shape_cast %55 : vector<1x1x4x128xf32> to vector<4x128xf32>
    %57 = arith.mulf %56, %23 : vector<4x128xf32>
    %58 = arith.index_cast %53 : i32 to index
    %59 = memref.load %arg3[%58] : memref<4xf32, #tpu.memory_space<smem>>
    %60 = vector.broadcast %59 : f32 to vector<4x128xf32>
    %61 = arith.mulf %57, %60 : vector<4x128xf32>
    %c0_36 = arith.constant 0 : index
    %62 = arith.index_cast %53 : i32 to index
    %c0_37 = arith.constant 0 : index
    %c0_38 = arith.constant 0 : index
    %63 = vector.load %arg4[%c0_36, %62, %c0_37, %c0_38] : memref<1x4x4x128xf32, #tpu.memory_space<vmem>>, vector<1x1x4x128xf32>
    %64 = vector.shape_cast %63 : vector<1x1x4x128xf32> to vector<4x128xf32>
    %65 = vector.shape_cast %61 : vector<4x128xf32> to vector<1x1x4x128xf32>
    tpu.vector_store %arg4[%c0_36, %62, %c0_37, %c0_38], %65 {strides = array<i32>} : memref<1x4x4x128xf32, #tpu.memory_space<vmem>>, vector<1x1x4x128xf32>,
    %c3_i32_39 = arith.constant 3 : i32
    %c1_i32_40 = arith.constant 1 : i32
    %66 = arith.muli %c3_i32_39, %c1_i32_40 : i32
    %c0_i32_41 = arith.constant 0 : i32
    %67 = arith.addi %c0_i32_41, %66 : i32
    %c0_42 = arith.constant 0 : index
    %68 = arith.index_cast %67 : i32 to index
    %c0_43 = arith.constant 0 : index
    %c0_44 = arith.constant 0 : index
    %69 = vector.load %arg2[%c0_42, %68, %c0_43, %c0_44] : memref<1x4x4x128xf32, #tpu.memory_space<vmem>>, vector<1x1x4x128xf32>
    %70 = vector.shape_cast %69 : vector<1x1x4x128xf32> to vector<4x128xf32>
    %71 = arith.mulf %70, %23 : vector<4x128xf32>
    %72 = arith.index_cast %67 : i32 to index
    %73 = memref.load %arg3[%72] : memref<4xf32, #tpu.memory_space<smem>>
    %74 = vector.broadcast %73 : f32 to vector<4x128xf32>
    %75 = arith.mulf %71, %74 : vector<4x128xf32>
    %c0_45 = arith.constant 0 : index
    %76 = arith.index_cast %67 : i32 to index
    %c0_46 = arith.constant 0 : index
    %c0_47 = arith.constant 0 : index
    %77 = vector.load %arg4[%c0_45, %76, %c0_46, %c0_47] : memref<1x4x4x128xf32, #tpu.memory_space<vmem>>, vector<1x1x4x128xf32>
    %78 = vector.shape_cast %77 : vector<1x1x4x128xf32> to vector<4x128xf32>
    %79 = vector.shape_cast %75 : vector<4x128xf32> to vector<1x1x4x128xf32>
    tpu.vector_store %arg4[%c0_45, %76, %c0_46, %c0_47], %79 {strides = array<i32>} : memref<1x4x4x128xf32, #tpu.memory_space<vmem>>, vector<1x1x4x128xf32>,
    %c4_i32_48 = arith.constant 4 : i32
    return
  }
  func.func @transform_0(%arg0: i32, %arg1: i32) -> (i32, i32, i32, i32) {
    %c0_i32 = arith.constant 0 : i32
    %c0_i32_0 = arith.constant 0 : i32
    %c0_i32_1 = arith.constant 0 : i32
    return %arg0, %c0_i32, %arg1, %c0_i32_0 : i32, i32, i32, i32
  }
  func.func @transform_1(%arg0: i32, %arg1: i32) -> i32 {
    %c0_i32 = arith.constant 0 : i32
    %c0_i32_0 = arith.constant 0 : i32
    return %c0_i32 : i32
  }
  func.func @transform_2(%arg0: i32, %arg1: i32) -> (i32, i32, i32, i32) {
    %c0_i32 = arith.constant 0 : i32
    %c0_i32_0 = arith.constant 0 : i32
    %c0_i32_1 = arith.constant 0 : i32
    return %arg0, %c0_i32, %arg1, %c0_i32_0 : i32, i32, i32, i32
  }
}

</mosaic_0001>

<bundles_post_ra>
// kernel: tpu_custom_call.1
= control target key start
LH: loop header
LB: loop body
LE: loop exit
PB: predicated region body
PF: predicated region fallthrough
CT: control target
= control target key end

     0   :  { %7 = vsyncpa [#allocation3], 0  ;;  %s788_s0 = inlined_call_operand.hbm [shape: f32[2,4,4,128], index: 0, kind: input, shape index: {}]   ;;  %s789_s1 = inlined_call_operand.hbm [shape: f32[4], index: 1, kind: input, shape index: {}]   ;;  %s790_s2 = inlined_call_operand.hbm [shape: f32[2,4,4,128], index: 2, kind: output, shape index: {}]  }
   0x1   :  { %9 = vsyncpa [#allocation3 + $0x1], 0 }
   0x2   :  { %10 = vsyncpa [#allocation5], 0 }
   0x3   :  { %11 = vsyncpa [#allocation4], 0 }
   0x4   :  { %13 = vsyncpa [#allocation4 + $0x1], 0  ;;  %s624_s9 = smov 0   ;;  %s626_s10 = smov 0  }
   0x5   :  { %s628_s11 = smov 0   ;;  %s630_s12 = smov 0  }
   0x6   :  { %s632_s13 = smov 0   ;;  %s634_s14 = smov 0  }
   0x7 LB: > { %s361_s15 = sadd.s32 4294967295, %s602_s14   ;;  %s362_s16 = sadd.s32 4294967294, %s602_s14   ;;  %s602_s14 = sphi %s634_s14, %s19_s14   ;;  %s598_s13 = sphi %s632_s13, %s802_s13   ;;  %s594_s12 = sphi %s630_s12, %s801_s12   ;;  %s590_s11 = sphi %s628_s11, %s800_s11   ;;  %s586_s10 = sphi %s626_s10, %s799_s10   ;;  %s582_s9 = sphi %s624_s9, %s798_s9  }
   0x8   : > { %s40_s17 = sadd.s32 1, %s590_s11  ;;  %p47_p0 = scmp.ne.s32.totalorder %s590_s11, %s586_s10 }
   0x9   : > { %p48_p1 = scmp.eq.s32.totalorder %s602_s14, 0  ;;  %p53_p2 = scmp.ne.s32.totalorder %s586_s10, %s582_s9 }
   0xa   : > { %p662_p3 = scmp.eq.s32.totalorder %s361_s15, 0  ;;  %p100_p4 = scmp.eq.s32.totalorder %s361_s15, 1 }
   0xb   : > { %p666_p5 = por %p48_p1, %p47_p0  ;;  %p106_p6 = scmp.eq.s32.totalorder %s362_s16, 1 }
   0xc   : > { %p672_p7 = por %p662_p3, %p53_p2  ;;  %p676_p8 = por %p100_p4, %p47_p0 }
   0xd   : > { %p680_p9 = por %p106_p6, %p53_p2  ;;  %p363_p10 = scmp.ge.s32.totalorder %s602_s14, 1 }
   0xe   : > { %p113_p11 = scmp.lt.s32.totalorder %s602_s14, 3  ;;  %s125_s25 = sshll.u32 %s789_s1, 4  ;;  %s126_s25 = int_to_ptr.hbm [resolvable:$true] %s125_s25 }
   0xf   : > { %p365_p13 = scmp.ge.s32.totalorder %s602_s14, 2  ;;  %p413_p0 = scmp.lt.s32.totalorder %s602_s14, 2 }
  0x10   : > { %p689_p12 = pnand %p363_p10, %p113_p11  ;;  %s31_s28 = sadd.s32 1, %s598_s13 }
  0x11   : > { %p699_p2 = pnand %p413_p0, %p666_p5  ;;  %p33_p6 = scmp.ge.s32.totalorder %s31_s28, 2 }
  0x12   : > { %p400_p1 = pneg %p689_p12  ;;  %s136_s29 = sand.u32 1, %s590_s11  }
  0x13   : > { %s604_s30 = smov [#allocation6]   ;;  %s804_s28 = smov (%p33_p6, %s31_s28), 0 }
  0x14   : > { %p401_p4 = pnand %p400_p1, %p662_p3  ;;  %s366_s3 = sshll.u32 %s136_s29, 4 }
  0x15   : > { %s35_s4 = ssub.s32 %s598_s13, %s804_s28  ;;  %s390_s5 = sshll.u32 %s598_s13, 4 }
  0x16   : > { %403 = dma.hbm_to_smem (!%p401_p4), %s126_s25, 16, %s604_s30, [#allocation5]  }
  0x17   : > { %p38_p10 = scmp.eq.s32.totalorder %s35_s4, 0  ;;  %s146_s8 = scalar_lea.hbm %s788_s0, %s390_s5 }
  0x18   : > { %s140_s15 = scalar_lea.vmem [#allocation2], %s366_s3  ;;  %s147_s23 = sshll.u32 %s146_s8, 4  ;;  %s148_s23 = int_to_ptr.hbm [resolvable:$true] %s147_s23 }
  0x19   : > { %s149_s16 = sshll.u32 %s140_s15, 4  ;;  %s137_s24 = scalar_lea.sflag [#allocation3], %s136_s29  ;;  %s150_s16 = int_to_ptr.vmem [resolvable:$true] %s149_s16 }
  0x1a   : > { %s718_s19 = scalar_select %p38_p10, %s590_s11, %s40_s17  }
  0x1b   : > { %s605_s25 = smov 64   ;;  %s606_s30 = smov 4  }
  0x1c   : > { %407 = dma.hbm_to_vmem [thread:$0]  (!%p699_p2), %s148_s23, 256, %s150_s16, %s137_s24, %s605_s25, %s605_s25, %s606_s30  }
  0x1d   : > { %161 = sbr.rel (%p689_p12) target bundleno = 79 (0x4f), region = 28  ;;  %s725_s4 = sand.u32 (!%p689_p12), 1, %s586_s10  }
  0x1e   : > { %s370_s17 = sshll.u32 (!%p689_p12), %s725_s4, 4  ;;  %s164_s3 = scalar_lea.sflag (!%p689_p12), [#allocation3], %s725_s4 }
  0x1f   : > { %s731_s5 = scalar_lea.vmem (!%p689_p12), [#allocation2], %s370_s17 }
  0x22   : > { %569 = dma.done.wait (%p672_p7), %s164_s3, 256  }
  0x23   : > { %571 = vsyncadd (%p672_p7), %s164_s3, 4294967040 }
  0x24   : > { %573 = dma.done.wait (%p662_p3), [#allocation5], 16  }
  0x25   : > { %575 = vsyncadd (%p662_p3), [#allocation5], 4294967280 }
  0x26   : > { %178 = sfence }
  0x27   : > { %v195_v0 = vld [vmem:[%s731_s5] sm:$0xf]  ;;  %v373_v1 = vld [vmem:[%s731_s5 + $0x4] sm:$0xf]  ;;  %v374_v4 = vld [vmem:[%s731_s5 + $0x8] sm:$0xf] }
  0x28   : > { %v196_v2 = vmul.f32 %v195_v0, %v195_v0  ;;  %v200_v3 = vmul.f32 %v373_v1, %v373_v1  ;;  %v375_v5 = vld [vmem:[%s731_s5 + $0xc] sm:$0xf]  ;;  %v204_v6 = vmul.f32 %v374_v4, %v374_v4  ;;  %s222_s18 = sld [smem:[#allocation6]]  ;;  %s391_s29 = sshll.u32 %s594_s12, 4  ;;  %v376_v18 = vld [vmem:[%s731_s5 + $0x4] sm:$0xf] }
  0x29   : > { %v208_v8 = vmul.f32 %v375_v5, %v375_v5  ;;  %s377_s20 = sld [smem:[#allocation6 + $0x1]]  ;;  %v379_v19 = vld [vmem:[%s731_s5 + $0x8] sm:$0xf]  ;;  %v382_v20 = vld [vmem:[%s731_s5 + $0xc] sm:$0xf]  ;;  %s260_s8 = scalar_lea.hbm %s790_s2, %s391_s29 }
  0x2a   : > { %v201_v7 = vadd.f32 %v200_v3, %v196_v2  ;;  %s380_s26 = sld [smem:[#allocation6 + $0x2]]  ;;  %s194_s12 = scalar_lea.vmem [#allocation7], %s370_s17 }
  0x2b   : > { %s383_s27 = sld [smem:[#allocation6 + $0x3]]  ;;  %s261_s15 = sshll.u32 %s194_s12, 4  ;;  %s262_s15 = int_to_ptr.vmem [resolvable:$true] %s261_s15 }
  0x2c   : > { %v205_v9 = vadd.f32 %v204_v6, %v201_v7  ;;  %s263_s16 = sshll.u32 %s260_s8, 4  ;;  %s248_s23 = scalar_lea.sflag [#allocation4], %s725_s4  ;;  %s264_s16 = int_to_ptr.hbm [resolvable:$true] %s263_s16 }
  0x2d   : > { %s530_s24 = sshra.s32 %s264_s16, 4  ;;  %s536_s3 = scalar_lea.hbm %s790_s2, 32  ;;  %s531_s24 = int_to_ptr.hbm [resolvable:$true] %s530_s24 }
  0x2e   : > { %v209_v10 = vadd.f32 %v208_v8, %v205_v9  ;;  %v223_v21 = vstv %s222_s18  ;;  %s532_s25 = scalar_lea.hbm %s531_s24, 16  ;;  %p537_p11 = scmp.lt.s32.totalorder %s531_s24, %s790_s2 }
  0x2f   : > { %v229_v23 = vstv %s377_s20  ;;  %p533_p3 = scmp.ne.s32.totalorder %s531_s24, %s532_s25  ;;  %p538_p12 = scmp.lt.s32.totalorder %s536_s3, %s532_s25 }
  0x30   : > { %v210_v11 = vmax.f32 %v209_v10, 1e-24  ;;  %v236_v24 = vstv %s380_s26 }
  0x31   : > { %v243_v25 = vstv %s383_s27  ;;  %p534_p5 = pnand %p533_p3, %p676_p8  ;;  %p539_p0 = por %p538_p12, %p537_p11 }
  0x32   : > { %469 = vrsqrt.f32 %v210_v11  ;;  %vm217_vm0 = vweird.f32 %v210_v11 }
  0x33   : > { %p535_p7 = pneg %p534_p5 }
  0x35   : > { %p540_p1 = pnand %p539_p0, %p535_p7 }
  0x38   : > { %v470_v12 = vpop.eup %469 }
  0x39   : > { %v212_v13 = vmul.f32 %v470_v12, %v210_v11  ;;  %vm218_vm1 = vweird.f32 %v470_v12 }
  0x3a   : > { %vm219_vm2 = vmor %vm217_vm0, %vm218_vm1 }
  0x3b   : > { %v213_v14 = vmul.f32 %v470_v12, %v212_v13 }
  0x3d   : > { %v214_v15 = vmul.f32 0.5, %v213_v14 }
  0x3f   : > { %v215_v16 = vsub.f32 1.5, %v214_v15 }
  0x41   : > { %v216_v17 = vmul.f32 %v470_v12, %v215_v16 }
  0x43   : > { %v220_v22 = vsel %vm219_vm2, %v470_v12, %v216_v17 }
  0x44   : > { %v221_v26 = vmul.f32 %v220_v22, %v195_v0  ;;  %v227_v27 = vmul.f32 %v376_v18, %v220_v22  ;;  %v234_v28 = vmul.f32 %v379_v19, %v220_v22  ;;  %v241_v29 = vmul.f32 %v382_v20, %v220_v22 }
  0x46   : > { %v224_v30 = vmul.f32 %v223_v21, %v221_v26  ;;  %v230_v31 = vmul.f32 %v229_v23, %v227_v27  ;;  %v237_v32 = vmul.f32 %v236_v24, %v234_v28  ;;  %v244_v33 = vmul.f32 %v243_v25, %v241_v29 }
  0x48   : > { %225 = vst [vmem:[%s194_s12] sm:$0xf] %v224_v30 }
  0x49   : > { %378 = vst [vmem:[%s194_s12 + $0x4] sm:$0xf] %v230_v31 }
  0x4a   : > { %381 = vst [vmem:[%s194_s12 + $0x8] sm:$0xf] %v237_v32 }
  0x4b   : > { %384 = vst [vmem:[%s194_s12 + $0xc] sm:$0xf] %v244_v33 }
  0x4c   : > { %543 = shalt.err (!%p540_p1)
}
  0x4d   : > { %s607_s4 = smov 64   ;;  %s608_s20 = smov 4  }
  0x4e   : > { %398 = dma.vmem_to_hbm [thread:$0]  (%p676_p8), %s262_s15, 256, %s264_s16, %s248_s23, %s607_s4, %s607_s4, %s608_s20  }
  0x4f PF: > { %s278_s26 = sand.u32 1, %s582_s9   ;;  %p409_p2 = pnand %p365_p13, %p680_p9 }
  0x50   : > { %s279_s27 = scalar_lea.sflag [#allocation4], %s278_s26 }
  0x51   : > { %p410_p4 = pneg %p409_p2 }
  0x53   : > { %577 = dma.done.wait (%p410_p4), %s279_s27, 256  }
  0x54   : > { %579 = vsyncadd (%p410_p4), %s279_s27, 4294967040  ;;  %s19_s14 = sadd.s32 1, %s602_s14   ;;  %s798_s9 = smov %s586_s10 }
  0x55   : > { %p16_p6 = scmp.ge.s32.totalorder %s19_s14, 4   ;;  %s799_s10 = smov %s590_s11 }
  0x56   : > { %s800_s11 = smov %s718_s19  ;;  %s801_s12 = smov %s598_s13 }
  0x57   : > { %s802_s13 = smov %s804_s28  ;;  %18 = sbr.rel (!%p16_p6) target bundleno = 7 (0x7), region = 84 }
  0x5c   :  { %285 = vsyncpa [#allocation3], 1 }
  0x5d   :  { %287 = vsyncpa [#allocation3 + $0x1], 1 }
  0x5e   :  { %288 = vsyncpa [#allocation4], 1 }
  0x5f   :  { %290 = vsyncpa [#allocation4 + $0x1], 1 }
  0x60   :  { %291 = vsyncpa [#allocation5], 1 }
  0x61   :  { %293 = vsyncpa [#allocation5 + $0x1], 1 }

</bundles_post_ra>
